<compile_context>
chip_gen: v7x
topology: tpu7x:2x2x1
jax: 0.10.0
libtpu: 0.0.40
codegen_flags: <defaults>
</compile_context>

<pallas_src>
import jax
import jax.numpy as jnp
from jax.experimental import pallas as pl
from jax.experimental.pallas import tpu as pltpu

OUT_W = 8  # output lane width: col0=a_param, col1=b_param, col2=value, 3..7=0


def _ppo_kernel(x_ref,
                wfc_ref, bfc_ref,
                wc_ref, bc_ref,
                wh_ref, bh_ref,
                out_ref):
    # fc -> ReLU   (bf16 MXU operands, f32 accumulate + f32 elementwise)
    x = x_ref[...].astype(jnp.bfloat16)                      # (TB, input_dim)
    h = jnp.dot(x, wfc_ref[...],
                preferred_element_type=jnp.float32) + bfc_ref[...]
    h = jnp.maximum(h, 0.0)

    # common: Linear -> ReLU
    h = jnp.dot(h.astype(jnp.bfloat16), wc_ref[...],
                preferred_element_type=jnp.float32) + bc_ref[...]
    h = jnp.maximum(h, 0.0)

    # fused policy+value heads -> (TB, 8):
    #   col0,1 = policy logits, col2 = value, cols 3..7 = 0 (zero-padded W/b)
    heads = jnp.dot(h.astype(jnp.bfloat16), wh_ref[...],
                    preferred_element_type=jnp.float32) + bh_ref[...]

    pol0 = heads[:, 0:1]
    pol1 = heads[:, 1:2]

    # Beta-distribution parameterisation (matches the PyTorch ops, f32)
    mu = 0.5 * (jnp.tanh(pol0) + 1.0) * (1.0 - 0.002) + 0.001
    sigma = 0.05 * jax.nn.sigmoid(pol1) + 0.001
    inv_var = pl.reciprocal(sigma * sigma + 1e-8, approx=True)
    a_param = jnp.maximum(mu * mu * (1.0 - mu) * inv_var - mu, 0.001)
    inv_mu = pl.reciprocal(mu + 1e-8, approx=True)
    b_param = jnp.maximum(a_param * (inv_mu - 1.0), 0.001)

    # Patch only cols 0/1; col2 already holds value and cols >= 3 stay zero.
    col = jax.lax.broadcasted_iota(jnp.int32, heads.shape, 1)
    out_ref[...] = jnp.where(col == 0, a_param,
                             jnp.where(col == 1, b_param, heads))


def init_params(key, input_dim, hidden_dim):
    """Deterministic synthetic parameters (shapes match the nn.Module),
    stored as (in_features, out_features) == PyTorch weight.T, all f32."""
    ks = jax.random.split(key, 8)

    def lin(kw, kb, fan_in, fan_out):
        bound = 1.0 / jnp.sqrt(fan_in)
        w = jax.random.uniform(kw, (fan_in, fan_out), jnp.float32, -bound, bound)
        b = jax.random.uniform(kb, (1, fan_out), jnp.float32, -bound, bound)
        return w, b

    w_fc, b_fc = lin(ks[0], ks[1], input_dim, hidden_dim)
    w_common, b_common = lin(ks[2], ks[3], hidden_dim, hidden_dim)
    w_policy, b_policy = lin(ks[4], ks[5], hidden_dim, 2)
    w_value, b_value = lin(ks[6], ks[7], hidden_dim, 1)
    return dict(
        w_fc=w_fc, b_fc=b_fc,
        w_common=w_common, b_common=b_common,
        w_policy=w_policy, b_policy=b_policy,
        w_value=w_value, b_value=b_value,
    )


def pack_params(p):
    """One-time packing: bf16 matmul weights (no padding), fused heads with
    zero-padded columns 3..7, f32 biases."""
    hidden = p["w_fc"].shape[1]
    w_heads = (jnp.zeros((hidden, OUT_W), jnp.float32)
               .at[:, 0:2].set(p["w_policy"])
               .at[:, 2:3].set(p["w_value"]))
    b_heads = (jnp.zeros((1, OUT_W), jnp.float32)
               .at[:, 0:2].set(p["b_policy"])
               .at[:, 2:3].set(p["b_value"]))
    return dict(
        w_fc=p["w_fc"].astype(jnp.bfloat16), b_fc=p["b_fc"],
        w_common=p["w_common"].astype(jnp.bfloat16), b_common=p["b_common"],
        w_heads=w_heads.astype(jnp.bfloat16), b_heads=b_heads,
    )


def _round_up(n, m):
    return ((n + m - 1) // m) * m


def _choose_row_tile(B):
    """Row-tile size (multiple of 8).  Big tiles amortize the ~0.35us/step
    overhead; for big batches cap TB so the grid has >= 2 steps (v7x
    megacore)."""
    if B <= 1024:
        return max(8, _round_up(B, 8))                    # single tile
    return min(2048, _round_up(pl.cdiv(B, 2), 8))         # >= 2 tiles


def ppo_auction_forward(x, packed):
    """x: (B, input_dim) float32. Returns (a_param, b_param, value), each (B,)."""
    B, input_dim = x.shape
    hidden = packed["w_fc"].shape[1]

    TB = _choose_row_tile(B)
    if B < TB:
        # Tiny batch: pad rows up to one 8-aligned tile (negligible copy).
        rows = TB
        x_in = jnp.pad(x, ((0, rows - B), (0, 0)))
    else:
        # Large batch: stream x as-is (no padded copy of the whole batch);
        # a ragged last tile is masked by Pallas (OOB reads are row-local,
        # OOB output writes are dropped).
        rows = B
        x_in = x
    grid = (pl.cdiv(rows, TB),)

    const = lambda i: (0, 0)   # weights/biases resident across the whole grid
    row = lambda i: (i, 0)     # input/output stream over the batch

    wt_elems = input_dim * hidden + hidden * hidden + hidden * OUT_W
    cost = pl.CostEstimate(
        flops=2 * rows * wt_elems,
        transcendentals=4 * rows,                          # tanh, sigmoid, 2x rcp
        bytes_accessed=4 * rows * input_dim + 4 * rows * OUT_W
                       + 2 * wt_elems + 4 * (2 * hidden + OUT_W),
    )

    # VMEM request: double-buffered x/out streams + resident bf16 weights +
    # f32 intermediates, with generous slack; always far under v7x's 64 MiB.
    stream_bytes = 2 * 2 * TB * (input_dim * 4 + OUT_W * 4)
    act_bytes = 8 * TB * hidden * 4
    wt_bytes = 2 * 2 * 2 * wt_elems
    vmem_limit = int(max(4 * 1024 * 1024,
                         min(32 * 1024 * 1024,
                             stream_bytes + act_bytes + wt_bytes + (2 << 20))))

    out = pl.pallas_call(
        _ppo_kernel,
        out_shape=jax.ShapeDtypeStruct((rows, OUT_W), jnp.float32),
        grid=grid,
        in_specs=[
            pl.BlockSpec((TB, input_dim), row),         # x (streamed, f32)
            pl.BlockSpec((input_dim, hidden), const),   # w_fc      (bf16)
            pl.BlockSpec((1, hidden), const),           # b_fc      (f32)
            pl.BlockSpec((hidden, hidden), const),      # w_common  (bf16)
            pl.BlockSpec((1, hidden), const),           # b_common  (f32)
            pl.BlockSpec((hidden, OUT_W), const),       # w_heads   (bf16)
            pl.BlockSpec((1, OUT_W), const),            # b_heads   (f32)
        ],
        out_specs=pl.BlockSpec((TB, OUT_W), row),
        compiler_params=pltpu.CompilerParams(
            dimension_semantics=("parallel",),
            vmem_limit_bytes=vmem_limit,
        ),
        cost_estimate=cost,
    )(x_in,
      packed["w_fc"], packed["b_fc"],
      packed["w_common"], packed["b_common"],
      packed["w_heads"], packed["b_heads"])

    return out[:B, 0], out[:B, 1], out[:B, 2]


def reference_forward(x, p):
    """Pure-JAX f32 reference (unpacked params) == PyTorch module semantics."""
    h = jnp.maximum(x @ p["w_fc"] + p["b_fc"], 0.0)
    h = jnp.maximum(h @ p["w_common"] + p["b_common"], 0.0)
    pol = h @ p["w_policy"] + p["b_policy"]
    val = (h @ p["w_value"] + p["b_value"])[:, 0]
    mu = 0.5 * (jnp.tanh(pol[:, 0]) + 1.0) * (1.0 - 0.002) + 0.001
    sigma = 0.05 * jax.nn.sigmoid(pol[:, 1]) + 0.001
    a = jnp.maximum(mu ** 2 * (1.0 - mu) / (sigma ** 2 + 1e-8) - mu, 0.001)
    b = jnp.maximum(a * (1.0 / (mu + 1e-8) - 1.0), 0.001)
    return a, b, val


if __name__ == "__main__":
    # game.getStructure()['NUM_PLAYERS'] == 4  ->  input_dim = 24 + 3*5 = 39
    NUM_PLAYERS = 4
    SUMMARY_DIM, OPPONENT_DIM, HIDDEN_DIM = 24, 5, 64
    INPUT_DIM = SUMMARY_DIM + (NUM_PLAYERS - 1) * OPPONENT_DIM
    B = 2

    key = jax.random.PRNGKey(0)
    k_params, k_x = jax.random.split(key)
    params = init_params(k_params, INPUT_DIM, HIDDEN_DIM)
    packed = pack_params(params)
    x = jax.random.normal(k_x, (B, INPUT_DIM), jnp.float32)

    a_param, b_param, value = jax.block_until_ready(ppo_auction_forward(x, packed))

    # Correctness vs pure-f32 reference. Tolerances are relaxed because the
    # kernel uses bf16 MXU operands + the EUP approximate reciprocal, and the
    # Beta parameterisation divides by sigma^2 (~1e-3..2.5e-3), which amplifies
    # the matmul rounding error in a_param/b_param.
    a_ref, b_ref, v_ref = reference_forward(x, params)
    assert a_param.shape == (B,) and b_param.shape == (B,) and value.shape == (B,)
    assert jnp.all(jnp.isfinite(a_param)) and jnp.all(jnp.isfinite(b_param))
    assert jnp.allclose(a_param, a_ref, rtol=5e-2, atol=1e-2), (a_param, a_ref)
    assert jnp.allclose(b_param, b_ref, rtol=5e-2, atol=1e-2), (b_param, b_ref)
    assert jnp.allclose(value, v_ref, rtol=2e-2, atol=5e-3), (value, v_ref)

    print("KERNEL_OK")
</pallas_src>

<mosaic_0001>
module attributes {stable_mosaic.version = 11 : i64} {
  func.func @_ppo_kernel(%arg0: i32, %arg1: memref<8x39xf32, #tpu.memory_space<vmem>>, %arg2: memref<39x64xbf16, #tpu.memory_space<vmem>>, %arg3: memref<1x64xf32, #tpu.memory_space<vmem>>, %arg4: memref<64x64xbf16, #tpu.memory_space<vmem>>, %arg5: memref<1x64xf32, #tpu.memory_space<vmem>>, %arg6: memref<64x8xbf16, #tpu.memory_space<vmem>>, %arg7: memref<1x8xf32, #tpu.memory_space<vmem>>, %arg8: memref<8x8xf32, #tpu.memory_space<vmem>>) attributes {dimension_semantics = [#tpu.dimension_semantics<parallel>], iteration_bounds = array<i64: 1>, scalar_prefetch = 0 : i64, scratch_operands = 0 : i64, tpu.core_type = #tpu.core_type<tc>, window_params = [{transform_indices = @transform_0, window_bounds = array<i64: 8, 39>}, {pipeline_mode = #tpu.pipeline_mode<synchronous>, transform_indices = @transform_1, window_bounds = array<i64: 39, 64>}, {pipeline_mode = #tpu.pipeline_mode<synchronous>, transform_indices = @transform_2, window_bounds = array<i64: 1, 64>}, {pipeline_mode = #tpu.pipeline_mode<synchronous>, transform_indices = @transform_3, window_bounds = array<i64: 64, 64>}, {pipeline_mode = #tpu.pipeline_mode<synchronous>, transform_indices = @transform_4, window_bounds = array<i64: 1, 64>}, {pipeline_mode = #tpu.pipeline_mode<synchronous>, transform_indices = @transform_5, window_bounds = array<i64: 64, 8>}, {pipeline_mode = #tpu.pipeline_mode<synchronous>, transform_indices = @transform_6, window_bounds = array<i64: 1, 8>}, {transform_indices = @transform_7, window_bounds = array<i64: 8, 8>}]} {
    %c0 = arith.constant 0 : index
    %c0_0 = arith.constant 0 : index
    %0 = vector.load %arg1[%c0, %c0_0] : memref<8x39xf32, #tpu.memory_space<vmem>>, vector<8x39xf32>
    %1 = arith.truncf %0 : vector<8x39xf32> to vector<8x39xbf16>
    %c0_1 = arith.constant 0 : index
    %c0_2 = arith.constant 0 : index
    %2 = vector.load %arg2[%c0_1, %c0_2] : memref<39x64xbf16, #tpu.memory_space<vmem>>, vector<39x64xbf16>
    %cst = arith.constant dense<0.000000e+00> : vector<8x64xf32>
    %3 = tpu.matmul %1, %2, %cst {dimension_numbers = #tpu.dot_dimension_numbers<[1], [0], [0], [1], [0, 0, 1, 1], [], []>} : vector<8x39xbf16>, vector<39x64xbf16>, vector<8x64xf32> -> vector<8x64xf32>
    %c0_3 = arith.constant 0 : index
    %c0_4 = arith.constant 0 : index
    %4 = vector.load %arg3[%c0_3, %c0_4] : memref<1x64xf32, #tpu.memory_space<vmem>>, vector<1x64xf32>
    %5 = vector.broadcast %4 : vector<1x64xf32> to vector<8x64xf32>
    %6 = arith.addf %3, %5 : vector<8x64xf32>
    %cst_5 = arith.constant 0.000000e+00 : f32
    %7 = vector.broadcast %cst_5 : f32 to vector<8x64xf32>
    %8 = arith.maximumf %6, %7 : vector<8x64xf32>
    %9 = arith.truncf %8 : vector<8x64xf32> to vector<8x64xbf16>
    %c0_6 = arith.constant 0 : index
    %c0_7 = arith.constant 0 : index
    %10 = vector.load %arg4[%c0_6, %c0_7] : memref<64x64xbf16, #tpu.memory_space<vmem>>, vector<64x64xbf16>
    %cst_8 = arith.constant dense<0.000000e+00> : vector<8x64xf32>
    %11 = tpu.matmul %9, %10, %cst_8 {dimension_numbers = #tpu.dot_dimension_numbers<[1], [0], [0], [1], [0, 0, 1, 1], [], []>} : vector<8x64xbf16>, vector<64x64xbf16>, vector<8x64xf32> -> vector<8x64xf32>
    %c0_9 = arith.constant 0 : index
    %c0_10 = arith.constant 0 : index
    %12 = vector.load %arg5[%c0_9, %c0_10] : memref<1x64xf32, #tpu.memory_space<vmem>>, vector<1x64xf32>
    %13 = vector.broadcast %12 : vector<1x64xf32> to vector<8x64xf32>
    %14 = arith.addf %11, %13 : vector<8x64xf32>
    %cst_11 = arith.constant 0.000000e+00 : f32
    %15 = vector.broadcast %cst_11 : f32 to vector<8x64xf32>
    %16 = arith.maximumf %14, %15 : vector<8x64xf32>
    %17 = arith.truncf %16 : vector<8x64xf32> to vector<8x64xbf16>
    %c0_12 = arith.constant 0 : index
    %c0_13 = arith.constant 0 : index
    %18 = vector.load %arg6[%c0_12, %c0_13] : memref<64x8xbf16, #tpu.memory_space<vmem>>, vector<64x8xbf16>
    %cst_14 = arith.constant dense<0.000000e+00> : vector<8x8xf32>
    %19 = tpu.matmul %17, %18, %cst_14 {dimension_numbers = #tpu.dot_dimension_numbers<[1], [0], [0], [1], [0, 0, 1, 1], [], []>} : vector<8x64xbf16>, vector<64x8xbf16>, vector<8x8xf32> -> vector<8x8xf32>
    %c0_15 = arith.constant 0 : index
    %c0_16 = arith.constant 0 : index
    %20 = vector.load %arg7[%c0_15, %c0_16] : memref<1x8xf32, #tpu.memory_space<vmem>>, vector<1x8xf32>
    %21 = vector.broadcast %20 : vector<1x8xf32> to vector<8x8xf32>
    %22 = arith.addf %19, %21 : vector<8x8xf32>
    %23 = vector.extract_strided_slice %22 {offsets = [0, 0], sizes = [8, 1], strides = [1, 1]} : vector<8x8xf32> to vector<8x1xf32>
    %24 = vector.extract_strided_slice %22 {offsets = [0, 1], sizes = [8, 1], strides = [1, 1]} : vector<8x8xf32> to vector<8x1xf32>
    %25 = math.tanh %23 : vector<8x1xf32>
    %cst_17 = arith.constant 1.000000e+00 : f32
    %26 = vector.broadcast %cst_17 : f32 to vector<8x1xf32>
    %27 = arith.addf %25, %26 : vector<8x1xf32>
    %cst_18 = arith.constant 5.000000e-01 : f32
    %28 = vector.broadcast %cst_18 : f32 to vector<8x1xf32>
    %29 = arith.mulf %28, %27 : vector<8x1xf32>
    %cst_19 = arith.constant 9.980000e-01 : f32
    %30 = vector.broadcast %cst_19 : f32 to vector<8x1xf32>
    %31 = arith.mulf %29, %30 : vector<8x1xf32>
    %cst_20 = arith.constant 1.000000e-03 : f32
    %32 = vector.broadcast %cst_20 : f32 to vector<8x1xf32>
    %33 = arith.addf %31, %32 : vector<8x1xf32>
    %34 = arith.negf %24 : vector<8x1xf32>
    %35 = math.exp %34 : vector<8x1xf32>
    %cst_21 = arith.constant 1.000000e+00 : f32
    %36 = vector.broadcast %cst_21 : f32 to vector<8x1xf32>
    %37 = arith.addf %36, %35 : vector<8x1xf32>
    %38 = arith.divf %36, %37 : vector<8x1xf32>
    %cst_22 = arith.constant 5.000000e-02 : f32
    %39 = vector.broadcast %cst_22 : f32 to vector<8x1xf32>
    %40 = arith.mulf %39, %38 : vector<8x1xf32>
    %cst_23 = arith.constant 1.000000e-03 : f32
    %41 = vector.broadcast %cst_23 : f32 to vector<8x1xf32>
    %42 = arith.addf %40, %41 : vector<8x1xf32>
    %43 = arith.mulf %42, %42 : vector<8x1xf32>
    %cst_24 = arith.constant 9.99999993E-9 : f32
    %44 = vector.broadcast %cst_24 : f32 to vector<8x1xf32>
    %45 = arith.addf %43, %44 : vector<8x1xf32>
    %46 = tpu.reciprocal %45 {approx = true} : vector<8x1xf32> -> vector<8x1xf32>
    %47 = arith.mulf %33, %33 : vector<8x1xf32>
    %cst_25 = arith.constant 1.000000e+00 : f32
    %48 = vector.broadcast %cst_25 : f32 to vector<8x1xf32>
    %49 = arith.subf %48, %33 : vector<8x1xf32>
    %50 = arith.mulf %47, %49 : vector<8x1xf32>
    %51 = arith.mulf %50, %46 : vector<8x1xf32>
    %52 = arith.subf %51, %33 : vector<8x1xf32>
    %cst_26 = arith.constant 1.000000e-03 : f32
    %53 = vector.broadcast %cst_26 : f32 to vector<8x1xf32>
    %54 = arith.maximumf %52, %53 : vector<8x1xf32>
    %cst_27 = arith.constant 9.99999993E-9 : f32
    %55 = vector.broadcast %cst_27 : f32 to vector<8x1xf32>
    %56 = arith.addf %33, %55 : vector<8x1xf32>
    %57 = tpu.reciprocal %56 {approx = true} : vector<8x1xf32> -> vector<8x1xf32>
    %cst_28 = arith.constant 1.000000e+00 : f32
    %58 = vector.broadcast %cst_28 : f32 to vector<8x1xf32>
    %59 = arith.subf %57, %58 : vector<8x1xf32>
    %60 = arith.mulf %54, %59 : vector<8x1xf32>
    %cst_29 = arith.constant 1.000000e-03 : f32
    %61 = vector.broadcast %cst_29 : f32 to vector<8x1xf32>
    %62 = arith.maximumf %60, %61 : vector<8x1xf32>
    %63 = tpu.iota {dimensions = array<i32: 1>} : vector<8x8xi32>
    %c0_i32 = arith.constant 0 : i32
    %64 = vector.broadcast %c0_i32 : i32 to vector<8x8xi32>
    %65 = arith.cmpi eq, %63, %64 : vector<8x8xi32>
    %c1_i32 = arith.constant 1 : i32
    %66 = vector.broadcast %c1_i32 : i32 to vector<8x8xi32>
    %67 = arith.cmpi eq, %63, %66 : vector<8x8xi32>
    %68 = vector.shape_cast %62 : vector<8x1xf32> to vector<8x1xf32>
    %69 = vector.broadcast %68 : vector<8x1xf32> to vector<8x8xf32>
    %70 = arith.select %67, %69, %22 : vector<8x8xi1>, vector<8x8xf32>
    %71 = vector.shape_cast %54 : vector<8x1xf32> to vector<8x1xf32>
    %72 = vector.broadcast %71 : vector<8x1xf32> to vector<8x8xf32>
    %73 = arith.select %65, %72, %70 : vector<8x8xi1>, vector<8x8xf32>
    %c0_30 = arith.constant 0 : index
    %c0_31 = arith.constant 0 : index
    %74 = vector.load %arg8[%c0_30, %c0_31] : memref<8x8xf32, #tpu.memory_space<vmem>>, vector<8x8xf32>
    tpu.vector_store %arg8[%c0_30, %c0_31], %73 {strides = array<i32>} : memref<8x8xf32, #tpu.memory_space<vmem>>, vector<8x8xf32>,
    return
  }
  func.func @transform_0(%arg0: i32) -> (i32, i32) {
    %c0_i32 = arith.constant 0 : i32
    %c0_i32_0 = arith.constant 0 : i32
    return %arg0, %c0_i32 : i32, i32
  }
  func.func @transform_1(%arg0: i32) -> (i32, i32) {
    %c0_i32 = arith.constant 0 : i32
    %c0_i32_0 = arith.constant 0 : i32
    %c0_i32_1 = arith.constant 0 : i32
    return %c0_i32, %c0_i32_0 : i32, i32
  }
  func.func @transform_2(%arg0: i32) -> (i32, i32) {
    %c0_i32 = arith.constant 0 : i32
    %c0_i32_0 = arith.constant 0 : i32
    %c0_i32_1 = arith.constant 0 : i32
    return %c0_i32, %c0_i32_0 : i32, i32
  }
  func.func @transform_3(%arg0: i32) -> (i32, i32) {
    %c0_i32 = arith.constant 0 : i32
    %c0_i32_0 = arith.constant 0 : i32
    %c0_i32_1 = arith.constant 0 : i32
    return %c0_i32, %c0_i32_0 : i32, i32
  }
  func.func @transform_4(%arg0: i32) -> (i32, i32) {
    %c0_i32 = arith.constant 0 : i32
    %c0_i32_0 = arith.constant 0 : i32
    %c0_i32_1 = arith.constant 0 : i32
    return %c0_i32, %c0_i32_0 : i32, i32
  }
  func.func @transform_5(%arg0: i32) -> (i32, i32) {
    %c0_i32 = arith.constant 0 : i32
    %c0_i32_0 = arith.constant 0 : i32
    %c0_i32_1 = arith.constant 0 : i32
    return %c0_i32, %c0_i32_0 : i32, i32
  }
  func.func @transform_6(%arg0: i32) -> (i32, i32) {
    %c0_i32 = arith.constant 0 : i32
    %c0_i32_0 = arith.constant 0 : i32
    %c0_i32_1 = arith.constant 0 : i32
    return %c0_i32, %c0_i32_0 : i32, i32
  }
  func.func @transform_7(%arg0: i32) -> (i32, i32) {
    %c0_i32 = arith.constant 0 : i32
    %c0_i32_0 = arith.constant 0 : i32
    return %arg0, %c0_i32 : i32, i32
  }
}

</mosaic_0001>

<bundles_post_ra>
// kernel: tpu_custom_call.1
= control target key start
LH: loop header
LB: loop body
LE: loop exit
PB: predicated region body
PF: predicated region fallthrough
CT: control target
= control target key end

     0   :  { %12 = vsyncpa [#allocation3], 0  ;;  %s616_s0 = inlined_call_operand.vmem [shape: f32[8,39], index: 0, kind: input, shape index: {}]   ;;  %s617_s1 = inlined_call_operand.hbm [shape: bf16[39,64], index: 1, kind: input, shape index: {}]   ;;  %s618_s2 = inlined_call_operand.vmem [shape: f32[1,64], index: 2, kind: input, shape index: {}]   ;;  %s619_s3 = inlined_call_operand.vmem [shape: bf16[64,64], index: 3, kind: input, shape index: {}]   ;;  %s620_s4 = inlined_call_operand.vmem [shape: f32[1,64], index: 4, kind: input, shape index: {}]   ;;  %s621_s5 = inlined_call_operand.vmem [shape: bf16[64,8], index: 5, kind: input, shape index: {}]   ;;  %s622_s6 = inlined_call_operand.vmem [shape: f32[1,8], index: 6, kind: input, shape index: {}]   ;;  %s623_s7 = inlined_call_operand.hbm [shape: f32[8,8], index: 7, kind: output, shape index: {}]  }
   0x1   :  { %13 = vsyncpa [#allocation4], 0  ;;  %s502_s24 = smov [#allocation2]   ;;  %s454_s28 = scalar_lea.hbm %s617_s1, 320 }
   0x2   :  { %s21_s25 = sshll.u32 %s502_s24, 4  ;;  %p455_p0 = scmp.ne.s32.totalorder %s617_s1, %s454_s28  ;;  %s22_s25 = int_to_ptr.vmem [resolvable:$true] %s21_s25 }
   0x3   :  { %p458_p1 = scmp.lt.u32.totalorder %s454_s28, %s617_s1 }
   0x5   :  { %p460_p2 = pnand %p458_p1, %p455_p0 }
   0x7   :  { %463 = shalt.err (!%p460_p2)
}
   0x8   :  { %s464_s10 = scalar_lea.vmem %s22_s25, 320  ;;  %p469_p4 = scmp.lt.s32.totalorder %s22_s25, %s22_s25 }
   0x9   :  { %p465_p3 = scmp.ne.s32.totalorder %s22_s25, %s464_s10  ;;  %p470_p5 = scmp.lt.s32.totalorder %s464_s10, %s464_s10 }
   0xb   :  { %p471_p6 = por %p470_p5, %p469_p4 }
   0xd   :  { %p472_p7 = pnand %p471_p6, %p465_p3 }
   0xf   :  { %475 = shalt.err (!%p472_p7)
}
  0x10   :  { %s503_s11 = smov 64   ;;  %s504_s12 = smov 4  }
  0x11   :  { %27 = dma.hbm_to_vmem [thread:$0]  %s617_s1, 320, %s22_s25, [#allocation3], %s503_s11, %s503_s11, %s504_s12  }
  0x12   :  { %498 = dma.done.wait [#allocation3], 320  }
  0x13   :  { %499 = vsyncadd [#allocation3], 4294966976  ;;  %v505_v0 = vmov 0.0   ;;  %vm506_vm0 = vmmov 0   ;;  %vm75_vm1 = vcmask 1042432   ;;  %vm76_vm2 = vcmask 1043456  }
  0x14   :  { %388 = vmatprep.subr.bf16.mxu0 %v505_v0  ;;  %398 = vmatprep.subr.bf16.mxu1 %v505_v0  ;;  %v433_v1 = vld [vmem:[#allocation2] sm:$0xff]   ;;  %v507_v2 = vmov 65535   ;;  %v434_v4 = vld [vmem:[#allocation2 + $0x8] sm:$0xff]   ;;  %v435_v5 = vld [vmem:[#allocation2 + $0x10] ss:$0 sps:$4 sm:$0xff]   ;;  %vm71_vm3 = vcmask 318464  }
  0x15   :  { %394 = vmatprep.mubr.msk.bf16.mxu0 %vm506_vm0, %v505_v0  ;;  %406 = vmatprep.mubr.msk.bf16.mxu1 %vm506_vm0, %v505_v0  ;;  %v77_v3 = vsel %vm75_vm1, 4294967295, %v507_v2  ;;  %v436_v7 = vld [vmem:[%s619_s3] sm:$0xff]   ;;  %v437_v9 = vld [vmem:[%s619_s3 + $0x8] sm:$0xff]   ;;  %v438_v12 = vld [vmem:[%s619_s3 + $0x10] sm:$0xff]   ;;  %vm163_vm4 = vcmask 523264   ;;  %v508_v48 = vmov 0  }
  0x16   :  { %389 = vmatpush3.bf16.msra.mxu0 %v433_v1  ;;  %v78_v6 = vsel %vm76_vm2, %v77_v3, 0  ;;  %v42_v8 = vld [vmem:[%s616_s0] sm:$0xff]  ;;  %399 = vmatpush3.bf16.msra.mxu1 %v436_v7  ;;  %v439_v13 = vld [vmem:[%s619_s3 + $0x18] sm:$0xff]   ;;  %v441_v15 = vld [vmem:[%s621_s5 + $0x8] sm:$0xff]   ;;  %v322_v3 = vlaneseq  ;;  %vm338_vm7 = vcmask 64512  }
  0x17   :  { %390 = vmatprep.subr.bf16.mxu0 %v505_v0  ;;  %v80_v10 = vand.u32 %v435_v5, %v78_v6  ;;  %400 = vmatprep.subr.bf16.mxu1 %v505_v0  ;;  %v43_v11 = vpack.c.bf16 %v42_v8, %v42_v8  ;;  %v440_v14 = vld [vmem:[%s621_s5] sm:$0xff]   ;;  %v442_v24 = vld [vmem:[%s621_s5 + $0x10] sm:$0xff]   ;;  %v443_v25 = vld [vmem:[%s621_s5 + $0x18] sm:$0xff]   ;;  %s510_s5 = smov [#allocation5]  }
  0x18   :  { %v355_v16 = vld [vmem:[%s618_s2] ss:$0 sm:$0xff]  ;;  %432 = vset.pattern.permute.xlu1 %v508_v48  ;;  %431 = vset.pattern.permute.xlu0 %v508_v48 }
  0x19   :  { %v360_v26 = vld [vmem:[%s620_s4] ss:$0 sm:$0xff]  ;;  %s509_s4 = smov 127  }
  0x1a   :  { %391 = vmatpush3.bf16.msra.mxu0 %v434_v4  ;;  %401 = vmatpush3.bf16.msra.mxu1 %v437_v9  ;;  %v366_v34 = vld [vmem:[%s622_s6] ss:$0 sm:$0xff]  ;;  %v323_v4 = vand.u32 127, %v322_v3  ;;  %s346_s6 = sshll.u32 %s510_s5, 4  ;;  %s347_s6 = int_to_ptr.vmem [resolvable:$true] %s346_s6 }
  0x1b   :  { %392 = vmatprep.subr.bf16.mxu0 %v505_v0  ;;  %402 = vmatprep.subr.bf16.mxu1 %v505_v0  ;;  %s476_s12 = scalar_lea.vmem %s347_s6, 128  ;;  %p481_p9 = scmp.lt.s32.totalorder %s347_s6, %s347_s6 }
  0x1c   :  { %vm325_vm5 = vcmp.eq.s32.totalorder %v323_v4, 1  ;;  %vm324_vm6 = vcmp.eq.s32.totalorder %v323_v4, 0  ;;  %p477_p8 = scmp.ne.s32.totalorder %s347_s6, %s476_s12  ;;  %p482_p10 = scmp.lt.s32.totalorder %s476_s12, %s476_s12 }
  0x1e   :  { %393 = vmatpush3.bf16.msra.mxu0 %v80_v10  ;;  %403 = vmatpush3.bf16.msra.mxu1 %v438_v12  ;;  %p483_p11 = por %p482_p10, %p481_p9 }
  0x1f   :  { %410 = vmatprep.subr.bf16.mxu0 %v505_v0  ;;  %404 = vmatprep.subr.bf16.mxu1 %v505_v0 }
  0x20   :  { %p484_p12 = pnand %p483_p11, %p477_p8 }
  0x21   :  { %395 = vmatmul.mubr.msk.bf16.vlgmr.msra.gmra.mrb[0].mxu0 %vm71_vm3, %v43_v11 }
  0x22   :  { %418 = vmatprep.mubr.msk.bf16.mxu0 %vm506_vm0, %v505_v0  ;;  %405 = vmatpush3.bf16.msra.mxu1 %v439_v13 }
  0x23   :  { %411 = vmatpush3.bf16.msra.mxu0 %v440_v14 }
  0x24   :  { %412 = vmatprep.subr.bf16.mxu0 %v505_v0 }
  0x27   :  { %413 = vmatpush3.bf16.msra.mxu0 %v441_v15 }
  0x28   :  { %414 = vmatprep.subr.bf16.mxu0 %v505_v0 }
  0x2b   :  { %415 = vmatpush3.bf16.msra.mxu0 %v442_v24 }
  0x2c   :  { %416 = vmatprep.subr.bf16.mxu0 %v505_v0 }
  0x2f   :  { %417 = vmatpush3.bf16.msra.mxu0 %v443_v25 }
  0xf4   :  { %v116_v17 = vpop.f32.mrb[0].mxu0 }
  0xf5   :  { %v117_v18 = vadd.f32 %v355_v16, %v116_v17  ;;  %v396_v19 = vpop.f32.mrb[1].mxu0 }
  0xf6   :  { %v119_v20 = vpop.f32.mrb[2].mxu0 }
  0xf7   :  { %v122_v21 = vmax.f32 %v117_v18, 0.0  ;;  %v397_v22 = vpop.f32.mrb[3].mxu0 }
  0xf9   :  { %v123_v23 = vpack.c.bf16 %v122_v21, %v122_v21 }
  0xfb   :  { %407 = vmatmul.mubr.msk.bf16.vlgmr.msra.gmra.mrb[0].mxu1 %vm163_vm4, %v123_v23 }
 0x1ce   :  { %v201_v27 = vpop.f32.mrb[0].mxu1 }
 0x1cf   :  { %v202_v28 = vadd.f32 %v360_v26, %v201_v27  ;;  %v408_v29 = vpop.f32.mrb[1].mxu1 }
 0x1d0   :  { %v204_v30 = vpop.f32.mrb[2].mxu1 }
 0x1d1   :  { %v207_v31 = vmax.f32 %v202_v28, 0.0  ;;  %v409_v32 = vpop.f32.mrb[3].mxu1 }
 0x1d3   :  { %v208_v33 = vpack.c.bf16 %v207_v31, %v207_v31 }
 0x1d5   :  { %419 = vmatmul.mubr.msk.bf16.vlgmr.msra.gmra.mrb[4].mxu0 %vm163_vm4, %v208_v33 }
 0x2a8   :  { %v285_v35 = vpop.f32.mrb[4].mxu0 }
 0x2a9   :  { %v286_v36 = vadd.f32 %v366_v34, %v285_v35  ;;  %v420_v37 = vpop.f32.mrb[5].mxu0 }
 0x2aa   :  { %v288_v38 = vpop.f32.mrb[6].mxu0 }
 0x2ab   :  { %v372_v39 = vmul.f32 -1.442695, %v286_v36  ;;  %v421_v40 = vpop.f32.mrb[7].mxu0 }
 0x2ad   :  { %444 = vpow2.f32 %v372_v39 }
 0x2b7   :  { %v445_v41 = vpop.eup %444 }
 0x2b8   :  { %v299_v42 = vadd.f32 1.0, %v445_v41 }
 0x2ba   :  { %446 = vrcp.f32 %v299_v42 }
 0x2c4   :  { %v447_v43 = vpop.eup %446 }
 0x2c5   :  { %v302_v44 = vmul.f32 0.05, %v447_v43 }
 0x2c7   :  { %v303_v45 = vadd.f32 0.001, %v302_v44 }
 0x2c9   :  { %v304_v46 = vmul.f32 %v303_v45, %v303_v45 }
 0x2cb   :  { %v305_v47 = vadd.f32 1e-08, %v304_v46 }
 0x2cd   :  { %448 = vrcp.f32 %v305_v47 }
 0x2ce   :  { %450 = vtanh.f32 %v286_v36 }
 0x2d7   :  { %v449_v49 = vpop.eup %448 }
 0x2d8   :  { %311 = vrot.lane.b32.xlu0 %v449_v49, %s509_s4  ;;  %v451_v50 = vpop.eup %450 }
 0x2d9   :  { %v292_v51 = vadd.f32 1.0, %v451_v50 }
 0x2db   :  { %v293_v52 = vmul.f32 0.5, %v292_v51 }
 0x2dd   :  { %v294_v53 = vmul.f32 0.998, %v293_v52 }
 0x2df   :  { %v295_v54 = vadd.f32 0.001, %v294_v53 }
 0x2e1   :  { %v317_v55 = vadd.f32 1e-08, %v295_v54  ;;  %v307_v56 = vmul.f32 %v295_v54, %v295_v54  ;;  %v308_v57 = vsub.f32 1.0, %v295_v54 }
 0x2e3   :  { %452 = vrcp.f32 %v317_v55  ;;  %v309_v58 = vmul.f32 %v308_v57, %v307_v56 }
 0x2ed   :  { %v453_v61 = vpop.eup %452 }
 0x2ee   :  { %v373_v0 = vadd.f32 -1.0, %v453_v61 }
 0x34a   :  { %v312_v59 = vpop.permute.xlu0 %311 }
 0x34b   :  { %v314_v60 = vmul.f32 %v312_v59, %v309_v58 }
 0x34d   :  { %v315_v62 = vsub.f32 %v314_v60, %v295_v54 }
 0x34f   :  { %v316_v63 = vmax.f32 %v315_v62, 0.001 }
 0x351   :  { %334 = vperm.xlu1 %432, %v316_v63   ;;  %v320_v1 = vmul.f32 %v373_v0, %v316_v63 }
 0x353   :  { %v321_v2 = vmax.f32 %v320_v1, 0.001 }
 0x355   :  { %328 = vperm.xlu0 %431, %v321_v2  }
 0x3d0   :  { %v335_v6 = vpop.permute.xlu1 %334 }
 0x3d4   :  { %v329_v5 = vpop.permute.xlu0 %328 }
 0x3d5   :  { %v331_v7 = vsel %vm325_vm5, %v329_v5, %v286_v36 }
 0x3d6   :  { %v337_v8 = vsel %vm324_vm6, %v335_v6, %v331_v7 }
 0x3d7   :  { %339 = vst.msk [vmem:[#allocation5] sm:$0xff] %vm338_vm7, %v337_v8 }
 0x3d8   :  { %487 = shalt.err (!%p484_p12)
}
 0x3d9   :  { %s488_s1 = scalar_lea.hbm %s623_s7, 128 }
 0x3da   :  { %p489_p13 = scmp.ne.s32.totalorder %s623_s7, %s488_s1  ;;  %p492_p0 = scmp.lt.u32.totalorder %s488_s1, %s623_s7 }
 0x3dc   :  { %p494_p1 = pnand %p492_p0, %p489_p13 }
 0x3de   :  { %497 = shalt.err (!%p494_p1)
}
 0x3df   :  { %349 = dma.vmem_to_hbm [thread:$0]  %s347_s6, 128, %s623_s7, [#allocation4]  }
 0x3e0   :  { %500 = dma.done.wait [#allocation4], 128  }
 0x3e1   :  { %501 = vsyncadd [#allocation4], 4294967168 }
 0x3e2   :  { %353 = vsyncpa [#allocation3], 1 }
 0x3e3   :  { %354 = vsyncpa [#allocation4], 1 }

</bundles_post_ra>
